<compile_context>
chip_gen: v7x
topology: tpu7x:2x2x1
jax: 0.10.0
libtpu: 0.0.40
codegen_flags: <defaults>
</compile_context>

<pallas_src>
import jax
import jax.numpy as jnp
from jax.experimental import pallas as pl
from jax.experimental.pallas import tpu as pltpu

EPS = 1e-5
LANE = 128


def _round_up(n, m=LANE):
    return (n + m - 1) // m * m


def _bn_train(h, gamma, beta):
    """BatchNorm1d training-mode stats (biased variance), eps=1e-5.

    Variance as E[x^2] - mean^2 (independent batch-axis reductions), clamped
    at 0 so f32 cancellation can never feed rsqrt a negative argument.
    """
    mean = jnp.mean(h, axis=0, keepdims=True)
    mean_sq = jnp.mean(h * h, axis=0, keepdims=True)
    var = jnp.maximum(mean_sq - mean * mean, 0.0)
    return (h - mean) * jax.lax.rsqrt(var + EPS) * gamma + beta


def _make_kernel(offsets, widths):
    """Build the kernel closed over static packed-parameter offsets."""

    def kernel(x_ref, u_ref, w1x_ref, w1u_ref, w2_ref, w3_ref, w4_ref,
               p_ref, out_ref):
        def seg(name):
            o = offsets[name]
            return p_ref[:, o:o + widths[name]]          # static, lane-aligned

        x = x_ref[...]                                    # (B, S) f32
        u = u_ref[...]                                    # (B, A) f32

        # bn_0: per-feature, so applying it to the two feature blocks
        # separately is exactly equivalent to BN on cat([x, u], 1).
        xb = _bn_train(x, seg("g0x"), seg("be0x"))
        ub = _bn_train(u, seg("g0u"), seg("be0u"))

        # l1 + relu, split matmul: [x|u] @ W1 == x @ W1[:S] + u @ W1[S:]
        h = (jnp.dot(xb.astype(jnp.bfloat16), w1x_ref[...],
                     preferred_element_type=jnp.float32)
             + jnp.dot(ub.astype(jnp.bfloat16), w1u_ref[...],
                       preferred_element_type=jnp.float32)
             + seg("b1"))
        h = jnp.maximum(h, 0.0)

        # l2
        h = jnp.dot(h.astype(jnp.bfloat16), w2_ref[...],
                    preferred_element_type=jnp.float32) + seg("b2")

        # bn_2 + relu
        h = _bn_train(h, seg("g2"), seg("be2"))
        h = jnp.maximum(h, 0.0)

        # l3 + relu
        h = jnp.dot(h.astype(jnp.bfloat16), w3_ref[...],
                    preferred_element_type=jnp.float32) + seg("b3")
        h = jnp.maximum(h, 0.0)

        # l4 (bf16 like the others)
        h = jnp.dot(h.astype(jnp.bfloat16), w4_ref[...],
                    preferred_element_type=jnp.float32) + seg("b4")

        # bn_4 + relu
        h = _bn_train(h, seg("g4"), seg("be4"))
        h = jnp.maximum(h, 0.0)

        # l5: output width 1 -> VPU multiply + lane reduction instead of an
        # MXU matmul whose N pads to 128/256.
        out_ref[...] = (jnp.sum(h * seg("w5"), axis=-1, keepdims=True)
                        + seg("b5"))

    return kernel


def prepare_params(params, state_dim, action_dim):
    """ONE-TIME parameter preparation (hoisted out of the per-call forward).

    Packs every small parameter into a single (1, P) f32 operand with
    128-lane-aligned segments, pre-splits W1 at the state/action boundary,
    and pre-casts all matmul weights to bf16.
    """
    S = state_dim
    seg_list = [
        ("g0x", params["g0"][:, :S]), ("be0x", params["be0"][:, :S]),
        ("g0u", params["g0"][:, S:]), ("be0u", params["be0"][:, S:]),
        ("b1", params["b1"]), ("b2", params["b2"]),
        ("g2", params["g2"]), ("be2", params["be2"]),
        ("b3", params["b3"]), ("b4", params["b4"]),
        ("g4", params["g4"]), ("be4", params["be4"]),
        ("w5", params["w5"].reshape(1, -1)),              # (50,1) -> (1,50)
        ("b5", params["b5"]),
    ]
    offsets, widths, chunks, off = {}, {}, [], 0
    for name, arr in seg_list:
        w = arr.shape[1]
        wp = _round_up(w)
        offsets[name] = off
        widths[name] = w
        chunks.append(jnp.pad(arr.astype(jnp.float32), ((0, 0), (0, wp - w))))
        off += wp
    packed = jnp.concatenate(chunks, axis=1)              # (1, P) f32

    arrays = {
        "w1x": params["w1"][:S, :].astype(jnp.bfloat16),
        "w1u": params["w1"][S:, :].astype(jnp.bfloat16),
        "w2": params["w2"].astype(jnp.bfloat16),
        "w3": params["w3"].astype(jnp.bfloat16),
        "w4": params["w4"].astype(jnp.bfloat16),
        "packed": packed,
    }
    # Materialize now so no prep work leaks into per-step forwards.
    arrays = jax.tree_util.tree_map(
        lambda a: jax.block_until_ready(jax.device_put(a)), arrays)
    meta = {"offsets": offsets, "widths": widths,
            "state_dim": state_dim, "action_dim": action_dim}
    return arrays, meta


def make_critic_forward(arrays, meta):
    """Returns a jitted forward(x, u) -> (B, 1) f32 closing over prepared params."""
    kernel = _make_kernel(meta["offsets"], meta["widths"])
    w1x, w1u, w2, w3, w4, packed = (arrays[k] for k in
                                    ("w1x", "w1u", "w2", "w3", "w4", "packed"))
    D0 = meta["state_dim"] + meta["action_dim"]
    vmem = pl.BlockSpec(memory_space=pltpu.MemorySpace.VMEM)

    @jax.jit
    def forward(x, u):
        B = x.shape[0]
        flops = 2 * B * (D0 * 400 + 400 * 300 + 300 * 300 + 300 * 50 + 50)
        bytes_accessed = int(
            B * D0 * 4 + w1x.size * 2 + w1u.size * 2 + w2.size * 2
            + w3.size * 2 + w4.size * 2 + packed.size * 4 + B * 4)
        cost = pl.CostEstimate(flops=flops,
                               transcendentals=D0 + 300 + 50,   # rsqrt / BN feat
                               bytes_accessed=bytes_accessed)
        return pl.pallas_call(
            kernel,
            out_shape=jax.ShapeDtypeStruct((B, 1), jnp.float32),
            in_specs=[vmem] * 8,
            out_specs=vmem,
            cost_estimate=cost,
        )(x.astype(jnp.float32), u.astype(jnp.float32),
          w1x, w1u, w2, w3, w4, packed)

    return forward


def init_params(key, state_dim, action_dim):
    """Deterministic parameter init matching the module's shapes.

    Linear: U(-1/sqrt(fan_in), 1/sqrt(fan_in)) like PyTorch; weights stored
    transposed as (in, out). BatchNorm affine params: ~1 / ~0 with a small
    deterministic perturbation so the affine path is exercised.
    """
    d0 = state_dim + action_dim
    dims = [(d0, 400), (400, 300), (300, 300), (300, 50), (50, 1)]
    params = {}
    keys = jax.random.split(key, 2 * len(dims) + 3)
    for i, (din, dout) in enumerate(dims):
        bound = 1.0 / jnp.sqrt(jnp.float32(din))
        w = jax.random.uniform(keys[2 * i], (din, dout), jnp.float32, -bound, bound)
        b = jax.random.uniform(keys[2 * i + 1], (1, dout), jnp.float32, -bound, bound)
        params[f"w{i + 1}"] = w
        params[f"b{i + 1}"] = b

    bn_dims = {"0": d0, "2": 300, "4": 50}
    for j, (name, n) in enumerate(bn_dims.items()):
        pert = 0.1 * jax.random.normal(keys[2 * len(dims) + j], (1, n), jnp.float32)
        params[f"g{name}"] = jnp.ones((1, n), jnp.float32) + pert
        params[f"be{name}"] = 0.05 * pert
    return params


if __name__ == "__main__":
    state_dim, action_dim, batch = 12, 4, 8

    key = jax.random.PRNGKey(0)
    kx, ku, kp = jax.random.split(key, 3)
    x = jax.random.normal(kx, (batch, state_dim), jnp.float32)
    u = jax.random.normal(ku, (batch, action_dim), jnp.float32)
    params = init_params(kp, state_dim, action_dim)

    arrays, meta = prepare_params(params, state_dim, action_dim)
    critic_forward = make_critic_forward(arrays, meta)

    out = critic_forward(x, u)
    jax.block_until_ready(out)
    assert out.shape == (batch, 1)
    print("KERNEL_OK")
</pallas_src>

<mosaic_0001>
module attributes {stable_mosaic.version = 11 : i64} {
  func.func @kernel(%arg0: memref<8x12xf32, #tpu.memory_space<vmem>>, %arg1: memref<8x4xf32, #tpu.memory_space<vmem>>, %arg2: memref<12x400xbf16, #tpu.memory_space<vmem>>, %arg3: memref<4x400xbf16, #tpu.memory_space<vmem>>, %arg4: memref<400x300xbf16, #tpu.memory_space<vmem>>, %arg5: memref<300x300xbf16, #tpu.memory_space<vmem>>, %arg6: memref<300x50xbf16, #tpu.memory_space<vmem>>, %arg7: memref<1x3200xf32, #tpu.memory_space<vmem>>, %arg8: memref<8x1xf32, #tpu.memory_space<vmem>>) attributes {dimension_semantics = [], scalar_prefetch = 0 : i64, scratch_operands = 0 : i64, tpu.core_type = #tpu.core_type<tc>} {
    %c0 = arith.constant 0 : index
    %c0_0 = arith.constant 0 : index
    %0 = vector.load %arg0[%c0, %c0_0] : memref<8x12xf32, #tpu.memory_space<vmem>>, vector<8x12xf32>
    %c0_1 = arith.constant 0 : index
    %c0_2 = arith.constant 0 : index
    %1 = vector.load %arg1[%c0_1, %c0_2] : memref<8x4xf32, #tpu.memory_space<vmem>>, vector<8x4xf32>
    %c0_3 = arith.constant 0 : index
    %c0_4 = arith.constant 0 : index
    %2 = vector.load %arg7[%c0_3, %c0_4] : memref<1x3200xf32, #tpu.memory_space<vmem>>, vector<1x12xf32>
    %c0_5 = arith.constant 0 : index
    %c128 = arith.constant 128 : index
    %3 = vector.load %arg7[%c0_5, %c128] : memref<1x3200xf32, #tpu.memory_space<vmem>>, vector<1x12xf32>
    %cst = arith.constant dense<0.000000e+00> : vector<12xf32>
    %4 = vector.multi_reduction <add>, %0, %cst [0] : vector<8x12xf32> to vector<12xf32>
    %5 = vector.shape_cast %4 : vector<12xf32> to vector<1x12xf32>
    %cst_6 = arith.constant 8.000000e+00 : f32
    %6 = vector.broadcast %cst_6 : f32 to vector<1x12xf32>
    %7 = arith.divf %5, %6 : vector<1x12xf32>
    %8 = arith.mulf %0, %0 : vector<8x12xf32>
    %cst_7 = arith.constant dense<0.000000e+00> : vector<12xf32>
    %9 = vector.multi_reduction <add>, %8, %cst_7 [0] : vector<8x12xf32> to vector<12xf32>
    %10 = vector.shape_cast %9 : vector<12xf32> to vector<1x12xf32>
    %cst_8 = arith.constant 8.000000e+00 : f32
    %11 = vector.broadcast %cst_8 : f32 to vector<1x12xf32>
    %12 = arith.divf %10, %11 : vector<1x12xf32>
    %13 = arith.mulf %7, %7 : vector<1x12xf32>
    %14 = arith.subf %12, %13 : vector<1x12xf32>
    %cst_9 = arith.constant 0.000000e+00 : f32
    %15 = vector.broadcast %cst_9 : f32 to vector<1x12xf32>
    %16 = arith.maximumf %14, %15 : vector<1x12xf32>
    %17 = vector.broadcast %7 : vector<1x12xf32> to vector<8x12xf32>
    %18 = arith.subf %0, %17 : vector<8x12xf32>
    %cst_10 = arith.constant 9.99999974E-6 : f32
    %19 = vector.broadcast %cst_10 : f32 to vector<1x12xf32>
    %20 = arith.addf %16, %19 : vector<1x12xf32>
    %21 = math.rsqrt %20 : vector<1x12xf32>
    %22 = vector.broadcast %21 : vector<1x12xf32> to vector<8x12xf32>
    %23 = arith.mulf %18, %22 : vector<8x12xf32>
    %24 = vector.broadcast %2 : vector<1x12xf32> to vector<8x12xf32>
    %25 = arith.mulf %23, %24 : vector<8x12xf32>
    %26 = vector.broadcast %3 : vector<1x12xf32> to vector<8x12xf32>
    %27 = arith.addf %25, %26 : vector<8x12xf32>
    %c0_11 = arith.constant 0 : index
    %c256 = arith.constant 256 : index
    %28 = vector.load %arg7[%c0_11, %c256] : memref<1x3200xf32, #tpu.memory_space<vmem>>, vector<1x4xf32>
    %c0_12 = arith.constant 0 : index
    %c384 = arith.constant 384 : index
    %29 = vector.load %arg7[%c0_12, %c384] : memref<1x3200xf32, #tpu.memory_space<vmem>>, vector<1x4xf32>
    %cst_13 = arith.constant dense<0.000000e+00> : vector<4xf32>
    %30 = vector.multi_reduction <add>, %1, %cst_13 [0] : vector<8x4xf32> to vector<4xf32>
    %31 = vector.shape_cast %30 : vector<4xf32> to vector<1x4xf32>
    %cst_14 = arith.constant 8.000000e+00 : f32
    %32 = vector.broadcast %cst_14 : f32 to vector<1x4xf32>
    %33 = arith.divf %31, %32 : vector<1x4xf32>
    %34 = arith.mulf %1, %1 : vector<8x4xf32>
    %cst_15 = arith.constant dense<0.000000e+00> : vector<4xf32>
    %35 = vector.multi_reduction <add>, %34, %cst_15 [0] : vector<8x4xf32> to vector<4xf32>
    %36 = vector.shape_cast %35 : vector<4xf32> to vector<1x4xf32>
    %cst_16 = arith.constant 8.000000e+00 : f32
    %37 = vector.broadcast %cst_16 : f32 to vector<1x4xf32>
    %38 = arith.divf %36, %37 : vector<1x4xf32>
    %39 = arith.mulf %33, %33 : vector<1x4xf32>
    %40 = arith.subf %38, %39 : vector<1x4xf32>
    %cst_17 = arith.constant 0.000000e+00 : f32
    %41 = vector.broadcast %cst_17 : f32 to vector<1x4xf32>
    %42 = arith.maximumf %40, %41 : vector<1x4xf32>
    %43 = vector.broadcast %33 : vector<1x4xf32> to vector<8x4xf32>
    %44 = arith.subf %1, %43 : vector<8x4xf32>
    %cst_18 = arith.constant 9.99999974E-6 : f32
    %45 = vector.broadcast %cst_18 : f32 to vector<1x4xf32>
    %46 = arith.addf %42, %45 : vector<1x4xf32>
    %47 = math.rsqrt %46 : vector<1x4xf32>
    %48 = vector.broadcast %47 : vector<1x4xf32> to vector<8x4xf32>
    %49 = arith.mulf %44, %48 : vector<8x4xf32>
    %50 = vector.broadcast %28 : vector<1x4xf32> to vector<8x4xf32>
    %51 = arith.mulf %49, %50 : vector<8x4xf32>
    %52 = vector.broadcast %29 : vector<1x4xf32> to vector<8x4xf32>
    %53 = arith.addf %51, %52 : vector<8x4xf32>
    %54 = arith.truncf %27 : vector<8x12xf32> to vector<8x12xbf16>
    %c0_19 = arith.constant 0 : index
    %c0_20 = arith.constant 0 : index
    %55 = vector.load %arg2[%c0_19, %c0_20] : memref<12x400xbf16, #tpu.memory_space<vmem>>, vector<12x400xbf16>
    %cst_21 = arith.constant dense<0.000000e+00> : vector<8x400xf32>
    %56 = tpu.matmul %54, %55, %cst_21 {dimension_numbers = #tpu.dot_dimension_numbers<[1], [0], [0], [1], [0, 0, 1, 1], [], []>} : vector<8x12xbf16>, vector<12x400xbf16>, vector<8x400xf32> -> vector<8x400xf32>
    %57 = arith.truncf %53 : vector<8x4xf32> to vector<8x4xbf16>
    %c0_22 = arith.constant 0 : index
    %c0_23 = arith.constant 0 : index
    %58 = vector.load %arg3[%c0_22, %c0_23] : memref<4x400xbf16, #tpu.memory_space<vmem>>, vector<4x400xbf16>
    %cst_24 = arith.constant dense<0.000000e+00> : vector<8x400xf32>
    %59 = tpu.matmul %57, %58, %cst_24 {dimension_numbers = #tpu.dot_dimension_numbers<[1], [0], [0], [1], [0, 0, 1, 1], [], []>} : vector<8x4xbf16>, vector<4x400xbf16>, vector<8x400xf32> -> vector<8x400xf32>
    %60 = arith.addf %56, %59 : vector<8x400xf32>
    %c0_25 = arith.constant 0 : index
    %c512 = arith.constant 512 : index
    %61 = vector.load %arg7[%c0_25, %c512] : memref<1x3200xf32, #tpu.memory_space<vmem>>, vector<1x400xf32>
    %62 = vector.broadcast %61 : vector<1x400xf32> to vector<8x400xf32>
    %63 = arith.addf %60, %62 : vector<8x400xf32>
    %cst_26 = arith.constant 0.000000e+00 : f32
    %64 = vector.broadcast %cst_26 : f32 to vector<8x400xf32>
    %65 = arith.maximumf %63, %64 : vector<8x400xf32>
    %66 = arith.truncf %65 : vector<8x400xf32> to vector<8x400xbf16>
    %c0_27 = arith.constant 0 : index
    %c0_28 = arith.constant 0 : index
    %67 = vector.load %arg4[%c0_27, %c0_28] : memref<400x300xbf16, #tpu.memory_space<vmem>>, vector<400x300xbf16>
    %cst_29 = arith.constant dense<0.000000e+00> : vector<8x300xf32>
    %68 = tpu.matmul %66, %67, %cst_29 {dimension_numbers = #tpu.dot_dimension_numbers<[1], [0], [0], [1], [0, 0, 1, 1], [], []>} : vector<8x400xbf16>, vector<400x300xbf16>, vector<8x300xf32> -> vector<8x300xf32>
    %c0_30 = arith.constant 0 : index
    %c1024 = arith.constant 1024 : index
    %69 = vector.load %arg7[%c0_30, %c1024] : memref<1x3200xf32, #tpu.memory_space<vmem>>, vector<1x300xf32>
    %70 = vector.broadcast %69 : vector<1x300xf32> to vector<8x300xf32>
    %71 = arith.addf %68, %70 : vector<8x300xf32>
    %c0_31 = arith.constant 0 : index
    %c1408 = arith.constant 1408 : index
    %72 = vector.load %arg7[%c0_31, %c1408] : memref<1x3200xf32, #tpu.memory_space<vmem>>, vector<1x300xf32>
    %c0_32 = arith.constant 0 : index
    %c1792 = arith.constant 1792 : index
    %73 = vector.load %arg7[%c0_32, %c1792] : memref<1x3200xf32, #tpu.memory_space<vmem>>, vector<1x300xf32>
    %cst_33 = arith.constant dense<0.000000e+00> : vector<300xf32>
    %74 = vector.multi_reduction <add>, %71, %cst_33 [0] : vector<8x300xf32> to vector<300xf32>
    %75 = vector.shape_cast %74 : vector<300xf32> to vector<1x300xf32>
    %cst_34 = arith.constant 8.000000e+00 : f32
    %76 = vector.broadcast %cst_34 : f32 to vector<1x300xf32>
    %77 = arith.divf %75, %76 : vector<1x300xf32>
    %78 = arith.mulf %71, %71 : vector<8x300xf32>
    %cst_35 = arith.constant dense<0.000000e+00> : vector<300xf32>
    %79 = vector.multi_reduction <add>, %78, %cst_35 [0] : vector<8x300xf32> to vector<300xf32>
    %80 = vector.shape_cast %79 : vector<300xf32> to vector<1x300xf32>
    %cst_36 = arith.constant 8.000000e+00 : f32
    %81 = vector.broadcast %cst_36 : f32 to vector<1x300xf32>
    %82 = arith.divf %80, %81 : vector<1x300xf32>
    %83 = arith.mulf %77, %77 : vector<1x300xf32>
    %84 = arith.subf %82, %83 : vector<1x300xf32>
    %cst_37 = arith.constant 0.000000e+00 : f32
    %85 = vector.broadcast %cst_37 : f32 to vector<1x300xf32>
    %86 = arith.maximumf %84, %85 : vector<1x300xf32>
    %87 = vector.broadcast %77 : vector<1x300xf32> to vector<8x300xf32>
    %88 = arith.subf %71, %87 : vector<8x300xf32>
    %cst_38 = arith.constant 9.99999974E-6 : f32
    %89 = vector.broadcast %cst_38 : f32 to vector<1x300xf32>
    %90 = arith.addf %86, %89 : vector<1x300xf32>
    %91 = math.rsqrt %90 : vector<1x300xf32>
    %92 = vector.broadcast %91 : vector<1x300xf32> to vector<8x300xf32>
    %93 = arith.mulf %88, %92 : vector<8x300xf32>
    %94 = vector.broadcast %72 : vector<1x300xf32> to vector<8x300xf32>
    %95 = arith.mulf %93, %94 : vector<8x300xf32>
    %96 = vector.broadcast %73 : vector<1x300xf32> to vector<8x300xf32>
    %97 = arith.addf %95, %96 : vector<8x300xf32>
    %cst_39 = arith.constant 0.000000e+00 : f32
    %98 = vector.broadcast %cst_39 : f32 to vector<8x300xf32>
    %99 = arith.maximumf %97, %98 : vector<8x300xf32>
    %100 = arith.truncf %99 : vector<8x300xf32> to vector<8x300xbf16>
    %c0_40 = arith.constant 0 : index
    %c0_41 = arith.constant 0 : index
    %101 = vector.load %arg5[%c0_40, %c0_41] : memref<300x300xbf16, #tpu.memory_space<vmem>>, vector<300x300xbf16>
    %cst_42 = arith.constant dense<0.000000e+00> : vector<8x300xf32>
    %102 = tpu.matmul %100, %101, %cst_42 {dimension_numbers = #tpu.dot_dimension_numbers<[1], [0], [0], [1], [0, 0, 1, 1], [], []>} : vector<8x300xbf16>, vector<300x300xbf16>, vector<8x300xf32> -> vector<8x300xf32>
    %c0_43 = arith.constant 0 : index
    %c2176 = arith.constant 2176 : index
    %103 = vector.load %arg7[%c0_43, %c2176] : memref<1x3200xf32, #tpu.memory_space<vmem>>, vector<1x300xf32>
    %104 = vector.broadcast %103 : vector<1x300xf32> to vector<8x300xf32>
    %105 = arith.addf %102, %104 : vector<8x300xf32>
    %cst_44 = arith.constant 0.000000e+00 : f32
    %106 = vector.broadcast %cst_44 : f32 to vector<8x300xf32>
    %107 = arith.maximumf %105, %106 : vector<8x300xf32>
    %108 = arith.truncf %107 : vector<8x300xf32> to vector<8x300xbf16>
    %c0_45 = arith.constant 0 : index
    %c0_46 = arith.constant 0 : index
    %109 = vector.load %arg6[%c0_45, %c0_46] : memref<300x50xbf16, #tpu.memory_space<vmem>>, vector<300x50xbf16>
    %cst_47 = arith.constant dense<0.000000e+00> : vector<8x50xf32>
    %110 = tpu.matmul %108, %109, %cst_47 {dimension_numbers = #tpu.dot_dimension_numbers<[1], [0], [0], [1], [0, 0, 1, 1], [], []>} : vector<8x300xbf16>, vector<300x50xbf16>, vector<8x50xf32> -> vector<8x50xf32>
    %c0_48 = arith.constant 0 : index
    %c2560 = arith.constant 2560 : index
    %111 = vector.load %arg7[%c0_48, %c2560] : memref<1x3200xf32, #tpu.memory_space<vmem>>, vector<1x50xf32>
    %112 = vector.broadcast %111 : vector<1x50xf32> to vector<8x50xf32>
    %113 = arith.addf %110, %112 : vector<8x50xf32>
    %c0_49 = arith.constant 0 : index
    %c2688 = arith.constant 2688 : index
    %114 = vector.load %arg7[%c0_49, %c2688] : memref<1x3200xf32, #tpu.memory_space<vmem>>, vector<1x50xf32>
    %c0_50 = arith.constant 0 : index
    %c2816 = arith.constant 2816 : index
    %115 = vector.load %arg7[%c0_50, %c2816] : memref<1x3200xf32, #tpu.memory_space<vmem>>, vector<1x50xf32>
    %cst_51 = arith.constant dense<0.000000e+00> : vector<50xf32>
    %116 = vector.multi_reduction <add>, %113, %cst_51 [0] : vector<8x50xf32> to vector<50xf32>
    %117 = vector.shape_cast %116 : vector<50xf32> to vector<1x50xf32>
    %cst_52 = arith.constant 8.000000e+00 : f32
    %118 = vector.broadcast %cst_52 : f32 to vector<1x50xf32>
    %119 = arith.divf %117, %118 : vector<1x50xf32>
    %120 = arith.mulf %113, %113 : vector<8x50xf32>
    %cst_53 = arith.constant dense<0.000000e+00> : vector<50xf32>
    %121 = vector.multi_reduction <add>, %120, %cst_53 [0] : vector<8x50xf32> to vector<50xf32>
    %122 = vector.shape_cast %121 : vector<50xf32> to vector<1x50xf32>
    %cst_54 = arith.constant 8.000000e+00 : f32
    %123 = vector.broadcast %cst_54 : f32 to vector<1x50xf32>
    %124 = arith.divf %122, %123 : vector<1x50xf32>
    %125 = arith.mulf %119, %119 : vector<1x50xf32>
    %126 = arith.subf %124, %125 : vector<1x50xf32>
    %cst_55 = arith.constant 0.000000e+00 : f32
    %127 = vector.broadcast %cst_55 : f32 to vector<1x50xf32>
    %128 = arith.maximumf %126, %127 : vector<1x50xf32>
    %129 = vector.broadcast %119 : vector<1x50xf32> to vector<8x50xf32>
    %130 = arith.subf %113, %129 : vector<8x50xf32>
    %cst_56 = arith.constant 9.99999974E-6 : f32
    %131 = vector.broadcast %cst_56 : f32 to vector<1x50xf32>
    %132 = arith.addf %128, %131 : vector<1x50xf32>
    %133 = math.rsqrt %132 : vector<1x50xf32>
    %134 = vector.broadcast %133 : vector<1x50xf32> to vector<8x50xf32>
    %135 = arith.mulf %130, %134 : vector<8x50xf32>
    %136 = vector.broadcast %114 : vector<1x50xf32> to vector<8x50xf32>
    %137 = arith.mulf %135, %136 : vector<8x50xf32>
    %138 = vector.broadcast %115 : vector<1x50xf32> to vector<8x50xf32>
    %139 = arith.addf %137, %138 : vector<8x50xf32>
    %cst_57 = arith.constant 0.000000e+00 : f32
    %140 = vector.broadcast %cst_57 : f32 to vector<8x50xf32>
    %141 = arith.maximumf %139, %140 : vector<8x50xf32>
    %c0_58 = arith.constant 0 : index
    %c2944 = arith.constant 2944 : index
    %142 = vector.load %arg7[%c0_58, %c2944] : memref<1x3200xf32, #tpu.memory_space<vmem>>, vector<1x50xf32>
    %143 = vector.broadcast %142 : vector<1x50xf32> to vector<8x50xf32>
    %144 = arith.mulf %141, %143 : vector<8x50xf32>
    %cst_59 = arith.constant dense<0.000000e+00> : vector<8xf32>
    %145 = vector.multi_reduction <add>, %144, %cst_59 [1] : vector<8x50xf32> to vector<8xf32>
    %146 = vector.shape_cast %145 : vector<8xf32> to vector<8x1xf32>
    %c0_60 = arith.constant 0 : index
    %c3072 = arith.constant 3072 : index
    %147 = vector.load %arg7[%c0_60, %c3072] : memref<1x3200xf32, #tpu.memory_space<vmem>>, vector<1x1xf32>
    %148 = vector.broadcast %147 : vector<1x1xf32> to vector<8x1xf32>
    %149 = arith.addf %146, %148 : vector<8x1xf32>
    %c0_61 = arith.constant 0 : index
    %c0_62 = arith.constant 0 : index
    %150 = vector.load %arg8[%c0_61, %c0_62] : memref<8x1xf32, #tpu.memory_space<vmem>>, vector<8x1xf32>
    tpu.vector_store %arg8[%c0_61, %c0_62], %149 {strides = array<i32>} : memref<8x1xf32, #tpu.memory_space<vmem>>, vector<8x1xf32>,
    return
  }
}

</mosaic_0001>

<bundles_post_ra>
// kernel: forward.1
= control target key start
LH: loop header
LB: loop body
LE: loop exit
PB: predicated region body
PF: predicated region fallthrough
CT: control target
= control target key end

     0   :  { %v127_v0 = vlaneseq  ;;  %vm257_vm0 = vcmask 1045504   ;;  %v2571_v2 = vmov 1983009808   ;;  %vm76_vm1 = vcmask 31744   ;;  %s3257_s3 = inlined_call_operand.vmem [shape: bf16[4,400], index: 3, kind: input, shape index: {}]   ;;  %s3258_s2 = inlined_call_operand.vmem [shape: bf16[12,400], index: 2, kind: input, shape index: {}]   ;;  %s3259_s1 = inlined_call_operand.vmem [shape: f32[8,4], index: 1, kind: input, shape index: {}]   ;;  %s3260_s0 = inlined_call_operand.vmem [shape: f32[8,12], index: 0, kind: input, shape index: {}]   ;;  %s3261_s4 = inlined_call_operand.vmem [shape: bf16[400,300], index: 4, kind: input, shape index: {}]   ;;  %s3262_s7 = inlined_call_operand.vmem [shape: f32[1,3200], index: 7, kind: input, shape index: {}]   ;;  %s3263_s5 = inlined_call_operand.vmem [shape: bf16[300,300], index: 5, kind: input, shape index: {}]   ;;  %s3264_s6 = inlined_call_operand.vmem [shape: bf16[300,50], index: 6, kind: input, shape index: {}]   ;;  %s3265_s8 = inlined_call_operand.vmem [shape: f32[8,1], index: 8, kind: output, shape index: {}]  }
   0x1   :  { %v121_v1 = vld [vmem:[%s3257_s3] sm:$0xff]  ;;  %v125_v3 = vunpack.c.l.s4 %v2571_v2  ;;  %v2572_v7 = vmov 0   ;;  %vm143_vm2 = vcmask 1041408   ;;  %vm34_vm3 = vcmask 97280  }
   0x2   :  { %v123_v4 = vcombine.high %v121_v1, %v121_v1  ;;  %v2623_v5 = vshrl.u32 %v127_v0, 7  ;;  %v2358_v6 = vld [vmem:[%s3258_s2 + $0x4] ss:$16 sps:$4 sm:$0x3f]   ;;  %188 = vmatprep.mubr.bf16.mxu1 %v2572_v7  ;;  %302 = vmatprep.mubr.bf16.mxu0 %v2572_v7  ;;  %v2072_v2 = vld [vmem:[%s3262_s7 + $0x3] ss:$0 sm:$0xff] }
   0x3   :  { %v2633_v8 = vld [vmem:[%s3259_s1] sm:$0xff]  ;;  %v126_v10 = vunpack.c.0.s8 %v125_v3  ;;  %2081 = vmatprep.subr.msk.bf16.mxu0 %vm257_vm0, %v2358_v6  ;;  %vm903_vm4 = vcmask 130048   ;;  %vm1083_vm5 = vcmask 359424   ;;  %vm2574_vm6 = vmmov 0  }
   0x4   :  { %v2638_v9 = vld [vmem:[%s3260_s0] sm:$0xff]  ;;  %v77_v12 = vsel %vm76_vm1, %v2633_v8, 0.0  ;;  %v85_v13 = vmul.f32 %v2633_v8, %v2633_v8  ;;  %vm2004_vm7 = vcmask 408576   ;;  %vm2063_vm8 = vcmask 7168  }
   0x5   :  { %v2360_v11 = vld [vmem:[%s3258_s2] ss:$16 sps:$4 sm:$0x3f]   ;;  %v44_v14 = vmul.f32 %v2638_v9, %v2638_v9  ;;  %v78_v15 = vrot.slane %v77_v12, 4  ;;  %v129_v16 = vsub.s32 %v126_v10, %v2623_v5  ;;  %v35_v19 = vsel %vm34_vm3, %v2638_v9, 0.0 }
   0x6   :  { %v259_v17 = vsel %vm257_vm0, %v2360_v11, 0  ;;  %v86_v18 = vsel %vm76_vm1, %v85_v13, 0.0  ;;  %v36_v22 = vrot.slane %v35_v19, 4  ;;  %v2366_v34 = vld [vmem:[%s3261_s4 + $0x4] ss:$12 sps:$4 sm:$0xff]  }
   0x7   :  { %271 = vmatpush1.bf16.msra.mxu0 %v259_v17  ;;  %v79_v20 = vadd.f32 %v78_v15, %v77_v12  ;;  %v87_v21 = vrot.slane %v86_v18, 4  ;;  %v45_v23 = vsel %vm34_vm3, %v44_v14, 0.0  ;;  %v130_v24 = vrot.slane %v121_v1, %v129_v16  ;;  %v2071_v1 = vld [vmem:[%s3262_s7 + $0x2] ss:$0 sm:$0xff]  ;;  %v2069_v6 = vld [vmem:[%s3262_s7] ss:$0 sm:$0xff] }
   0x8   :  { %v137_v25 = vrot.slane %v123_v4, %v129_v16  ;;  %v46_v26 = vrot.slane %v45_v23, 4  ;;  %v37_v29 = vadd.f32 %v36_v22, %v35_v19  ;;  %907 = vmatprep.subr.bf16.mxu0 %v2366_v34  ;;  %v2361_v13 = vld [vmem:[%s3258_s2 + $0xc] ss:$16 sps:$4 sm:$0x3f]   ;;  %v2372_v22 = vld [vmem:[%s3261_s4 + $0x34] ss:$12 sps:$4 sm:$0xff]  }
   0x9   :  { %v80_v27 = vrot.slane %v79_v20, 2  ;;  %v88_v28 = vadd.f32 %v87_v21, %v86_v18  ;;  %v138_v30 = vcombine.high %v130_v24, %v130_v24  ;;  %v145_v31 = vsel %vm143_vm2, %v130_v24, 0  ;;  %v2364_v14 = vld [vmem:[%s3261_s4] ss:$12 sps:$4 sm:$0xff]   ;;  %v2369_v18 = vld [vmem:[%s3261_s4 + $0x1c] ss:$12 sps:$4 sm:$0xff]  }
   0xa   :  { %v47_v32 = vadd.f32 %v46_v26, %v45_v23  ;;  %v139_v33 = vcombine.high %v137_v25, %v137_v25  ;;  %v38_v37 = vrot.slane %v37_v29, 2  ;;  %v151_v17 = vsel %vm143_vm2, %v137_v25, 0  ;;  %v2367_v21 = vld [vmem:[%s3261_s4 + $0x18] ss:$12 sps:$4 sm:$0xff]   ;;  %v2391_v23 = vld [vmem:[%s3261_s4 + $0xc8] ss:$12 sps:$4 sm:$0xff]  }
   0xb   :  { %v81_v35 = vadd.f32 %v80_v27, %v79_v20  ;;  %v89_v36 = vrot.slane %v88_v28, 2  ;;  %2073 = vmatprep.subr.msk.bf16.mxu1 %vm143_vm2, %v138_v30  ;;  %v2363_v20 = vld [vmem:[%s3258_s2 + $0x8] ss:$16 sps:$4 sm:$0x3f]   ;;  %v2370_v24 = vld [vmem:[%s3261_s4 + $0x30] ss:$12 sps:$4 sm:$0xff]  }
   0xc   :  { %v48_v38 = vrot.slane %v47_v32, 2  ;;  %157 = vmatpush1.bf16.msra.mxu1 %v145_v31  ;;  %v39_v41 = vadd.f32 %v38_v37, %v37_v29  ;;  %v265_v25 = vsel %vm257_vm0, %v2363_v20, 0  ;;  %v2375_v26 = vld [vmem:[%s3261_s4 + $0x4c] ss:$12 sps:$4 sm:$0xff]   ;;  %v2373_v27 = vld [vmem:[%s3261_s4 + $0x48] ss:$12 sps:$4 sm:$0xff]  }
   0xd   :  { %v82_v39 = vrot.slane %v81_v35, 1  ;;  %v90_v40 = vadd.f32 %v89_v36, %v88_v28  ;;  %2075 = vmatprep.subr.msk.bf16.mxu1 %vm143_vm2, %v139_v33  ;;  %v2378_v28 = vld [vmem:[%s3261_s4 + $0x64] ss:$12 sps:$4 sm:$0xff]   ;;  %v2392_v29 = vld [vmem:[%s3261_s4 + $0x8] ss:$12 sps:$4 sm:$0xff]  }
   0xe   :  { %v49_v42 = vadd.f32 %v48_v38, %v47_v32  ;;  %v40_v45 = vrot.slane %v39_v41, 1  ;;  %v2396_v30 = vld [vmem:[%s3261_s4 + $0xe0] ss:$12 sps:$4 sm:$0xff]   ;;  %v2381_v32 = vld [vmem:[%s3261_s4 + $0x7c] ss:$12 sps:$4 sm:$0xff]  }
   0xf   :  { %v83_v43 = vadd.f32 %v82_v39, %v81_v35  ;;  %v91_v44 = vrot.slane %v90_v40, 1  ;;  %v2376_v31 = vld [vmem:[%s3261_s4 + $0x60] ss:$12 sps:$4 sm:$0xff]   ;;  %v2401_v34 = vld [vmem:[%s3261_s4 + $0xf8] ss:$12 sps:$4 sm:$0xff]  }
  0x10   :  { %v50_v46 = vrot.slane %v49_v42, 1  ;;  %v41_v49 = vadd.f32 %v40_v45, %v39_v41  ;;  %v2397_v33 = vld [vmem:[%s3261_s4 + $0x20] ss:$12 sps:$4 sm:$0xff]   ;;  %v2379_v35 = vld [vmem:[%s3261_s4 + $0x78] ss:$12 sps:$4 sm:$0xff]  }
  0x11   :  { %v84_v47 = vmul.f32 0.125, %v83_v43  ;;  %v92_v48 = vadd.f32 %v91_v44, %v90_v40  ;;  %v2384_v36 = vld [vmem:[%s3261_s4 + $0x94] ss:$12 sps:$4 sm:$0xff]   ;;  %v2402_v37 = vld [vmem:[%s3261_s4 + $0x38] ss:$12 sps:$4 sm:$0xff]  }
  0x12   :  { %v51_v50 = vadd.f32 %v50_v46, %v49_v42  ;;  %v43_v53 = vmul.f32 0.125, %v41_v49  ;;  %v2406_v38 = vld [vmem:[%s3261_s4 + $0x110] ss:$12 sps:$4 sm:$0xff]   ;;  %v2387_v40 = vld [vmem:[%s3261_s4 + $0xac] ss:$12 sps:$4 sm:$0xff]  }
  0x13   :  { %v93_v51 = vmul.f32 0.125, %v92_v48  ;;  %v94_v52 = vmul.f32 %v84_v47, %v84_v47  ;;  %v97_v62 = vsub.f32 %v2633_v8, %v84_v47  ;;  %v2070_v8 = vld [vmem:[%s3262_s7 + $0x1] ss:$0 sm:$0xff]  ;;  %v2382_v39 = vld [vmem:[%s3261_s4 + $0x90] ss:$12 sps:$4 sm:$0xff]  }
  0x14   :  { %v52_v54 = vmul.f32 0.125, %v51_v50  ;;  %v53_v56 = vmul.f32 %v43_v53, %v43_v53  ;;  %v56_v63 = vsub.f32 %v2638_v9, %v43_v53  ;;  %v2407_v41 = vld [vmem:[%s3261_s4 + $0x50] ss:$12 sps:$4 sm:$0xff]   ;;  %v2411_v42 = vld [vmem:[%s3261_s4 + $0x128] ss:$12 sps:$4 sm:$0xff]  }
  0x15   :  { %v95_v55 = vsub.f32 %v93_v51, %v94_v52  ;;  %v2385_v43 = vld [vmem:[%s3261_s4 + $0xa8] ss:$12 sps:$4 sm:$0xff]   ;;  %v2390_v44 = vld [vmem:[%s3261_s4 + $0xc4] ss:$12 sps:$4 sm:$0xff]   ;;  %v2416_v46 = vld [vmem:[%s3261_s4 + $0x140] ss:$12 sps:$4 sm:$0xff]  }
  0x16   :  { %v54_v58 = vsub.f32 %v52_v54, %v53_v56  ;;  %v2412_v45 = vld [vmem:[%s3261_s4 + $0x68] ss:$12 sps:$4 sm:$0xff]   ;;  %v2388_v47 = vld [vmem:[%s3261_s4 + $0xc0] ss:$12 sps:$4 sm:$0xff]   ;;  %v2393_v50 = vld [vmem:[%s3261_s4 + $0xd8] ss:$12 sps:$4 sm:$0xff]  }
  0x17   :  { %v96_v57 = vmax.f32 %v95_v55, 0.0  ;;  %v2395_v48 = vld [vmem:[%s3261_s4 + $0xdc] ss:$12 sps:$4 sm:$0xff]   ;;  %v2417_v49 = vld [vmem:[%s3261_s4 + $0x80] ss:$12 sps:$4 sm:$0xff]  }
  0x18   :  { %v55_v60 = vmax.f32 %v54_v58, 0.0  ;;  %v2400_v51 = vld [vmem:[%s3261_s4 + $0xf4] ss:$12 sps:$4 sm:$0xff]   ;;  %v2398_v52 = vld [vmem:[%s3261_s4 + $0xf0] ss:$12 sps:$4 sm:$0xff]  }
  0x19   :  { %v98_v59 = vadd.f32 1e-05, %v96_v57  ;;  %v2405_v53 = vld [vmem:[%s3261_s4 + $0x10c] ss:$12 sps:$4 sm:$0xff]   ;;  %v2403_v54 = vld [vmem:[%s3261_s4 + $0x108] ss:$12 sps:$4 sm:$0xff]  }
  0x1a   :  { %v57_v61 = vadd.f32 1e-05, %v55_v60  ;;  %v2410_v55 = vld [vmem:[%s3261_s4 + $0x124] ss:$12 sps:$4 sm:$0xff]   ;;  %v2408_v56 = vld [vmem:[%s3261_s4 + $0x120] ss:$12 sps:$4 sm:$0xff]  }
  0x1b   :  { %2559 = vrsqrt.f32 %v98_v59  ;;  %v2415_v57 = vld [vmem:[%s3261_s4 + $0x13c] ss:$12 sps:$4 sm:$0xff]   ;;  %v2413_v58 = vld [vmem:[%s3261_s4 + $0x138] ss:$12 sps:$4 sm:$0xff]   ;;  %v2420_v59 = vld [vmem:[%s3261_s4 + $0x154] ss:$12 sps:$4 sm:$0xff]  }
  0x1c   :  { %2561 = vrsqrt.f32 %v57_v61  ;;  %v2418_v60 = vld [vmem:[%s3261_s4 + $0x150] ss:$12 sps:$4 sm:$0xff]   ;;  %v2421_v61 = vld [vmem:[%s3261_s4 + $0x158] ss:$12 sps:$4 sm:$0xff]  }
  0x25   :  { %v2560_v0 = vpop.eup %2559 }
  0x26   :  { %v100_v3 = vmul.f32 %v2560_v0, %v97_v62  ;;  %v2562_v4 = vpop.eup %2561  ;;  %v2422_v62 = vld [vmem:[%s3261_s4 + $0x98] ss:$12 sps:$4 sm:$0xff]   ;;  %v2426_v0 = vld [vmem:[%s3261_s4 + $0x170] ss:$12 sps:$4 sm:$0xff]  }
  0x27   :  { %v59_v9 = vmul.f32 %v2562_v4, %v56_v63  ;;  %v2425_v63 = vld [vmem:[%s3261_s4 + $0x16c] ss:$12 sps:$4 sm:$0xff]   ;;  %v2837_v4 = vsub.s32 0, %v2623_v5 }
  0x28   :  { %v107_v10 = vmul.f32 %v2071_v1, %v100_v3  ;;  %v2423_v1 = vld [vmem:[%s3261_s4 + $0x168] ss:$12 sps:$4 sm:$0xff]   ;;  %v2430_v3 = vld [vmem:[%s3261_s4 + $0x184] ss:$12 sps:$4 sm:$0xff]  }
  0x29   :  { %v66_v12 = vmul.f32 %v2069_v6, %v59_v9  ;;  %v2842_v6 = vld [vmem:[%s3262_s7 + $0x4] sm:$0xf] }
  0x2a   :  { %v114_v11 = vadd.f32 %v2072_v2, %v107_v10  ;;  %v2427_v2 = vld [vmem:[%s3261_s4 + $0xb0] ss:$12 sps:$4 sm:$0xff]   ;;  %v2845_v10 = vsub.s32 1, %v2623_v5  ;;  %v357_v9 = vrot.slane %v2842_v6, %v2837_v4 }
  0x2b   :  { %v73_v16 = vadd.f32 %v2070_v8, %v66_v12 }
  0x2c   :  { %v120_v15 = vpack.c.bf16 %v114_v11, %v114_v11 }
  0x2d   :  { %v115_v19 = vpack.c.bf16 %v73_v16, %v73_v16 }
  0x2e   :  { %2074 = vmatmul.mubr.msk.bf16.vlgmr.msra.gmra.mrb[0].mxu1 %vm76_vm1, %v120_v15 }
  0x2f   :  { %198 = vmatpush1.bf16.msra.mxu1 %v151_v17  ;;  %229 = vmatprep.mubr.bf16.mxu1 %v2572_v7 }
  0x30   :  { %2082 = vmatmul.mubr.msk.bf16.vlgmr.msra.gmra.mrb[0].mxu0 %vm34_vm3, %v115_v19  ;;  %2083 = vmatprep.subr.msk.bf16.mxu1 %vm257_vm0, %v2361_v13  ;;  %v361_v13 = vrot.slane %v2842_v6, %v2845_v10 }
  0x31   :  { %908 = vmatpush1.bf16.msra.mxu0 %v2364_v14 }
  0x32   :  { %909 = vmatprep.subr.bf16.mxu0 %v2369_v18 }
  0x35   :  { %910 = vmatpush1.bf16.msra.mxu0 %v2367_v21 }
  0x36   :  { %2076 = vmatmul.mubr.msk.bf16.vlgmr.msra.gmra.mrb[4].mxu1 %vm76_vm1, %v120_v15  ;;  %911 = vmatprep.subr.bf16.mxu0 %v2372_v22 }
  0x37   :  { %312 = vmatpush1.bf16.msra.mxu1 %v265_v25  ;;  %343 = vmatprep.mubr.bf16.mxu1 %v2572_v7 }
  0x38   :  { %2247 = vmatprep.subr.bf16.mxu1 %v2391_v23 }
  0x39   :  { %912 = vmatpush1.bf16.msra.mxu0 %v2370_v24 }
  0x3a   :  { %913 = vmatprep.subr.bf16.mxu0 %v2375_v26 }
  0x3d   :  { %914 = vmatpush1.bf16.msra.mxu0 %v2373_v27 }
  0x3e   :  { %2084 = vmatmul.mubr.msk.bf16.vlgmr.msra.gmra.mrb[8].mxu1 %vm34_vm3, %v115_v19  ;;  %915 = vmatprep.subr.bf16.mxu0 %v2378_v28  ;;  %v2428_v28 = vld [vmem:[%s3261_s4 + $0x180] ss:$12 sps:$4 sm:$0xff]  }
  0x3f   :  { %2248 = vmatpush3.bf16.msra.mxu1 %v2392_v29  ;;  %v2431_v29 = vld [vmem:[%s3261_s4 + $0x188] ss:$12 sps:$4 sm:$0xff]  }
  0x40   :  { %2249 = vmatprep.subr.bf16.mxu1 %v2396_v30 }
  0x41   :  { %916 = vmatpush1.bf16.msra.mxu0 %v2376_v31 }
  0x42   :  { %917 = vmatprep.subr.bf16.mxu0 %v2381_v32  ;;  %v2434_v32 = vld [vmem:[%s3261_s4 + $0x19c] ss:$12 sps:$4 sm:$0xff]  }
  0x43   :  { %2250 = vmatpush3.bf16.msra.mxu1 %v2397_v33 }
  0x44   :  { %2251 = vmatprep.subr.bf16.mxu1 %v2401_v34  ;;  %v368_v34 = vsub.s32 3, %v2623_v5 }
  0x45   :  { %918 = vmatpush1.bf16.msra.mxu0 %v2379_v35  ;;  %v2432_v35 = vld [vmem:[%s3261_s4 + $0x198] ss:$12 sps:$4 sm:$0xff]  }
  0x46   :  { %919 = vmatprep.subr.bf16.mxu0 %v2384_v36  ;;  %v2435_v36 = vld [vmem:[%s3261_s4 + $0x1a0] ss:$12 sps:$4 sm:$0xff]  }
  0x47   :  { %2252 = vmatpush3.bf16.msra.mxu1 %v2402_v37  ;;  %v2438_v37 = vld [vmem:[%s3261_s4 + $0x1b4] ss:$12 sps:$4 sm:$0xff]  }
  0x48   :  { %2253 = vmatprep.subr.bf16.mxu1 %v2406_v38 }
  0x49   :  { %920 = vmatpush1.bf16.msra.mxu0 %v2382_v39  ;;  %v369_v39 = vrot.slane %v2842_v6, %v368_v34  ;;  %v2497_v34 = vld [vmem:[%s3263_s5 + $0x20] ss:$12 sps:$4 sm:$0xff]  }
  0x4a   :  { %921 = vmatprep.subr.bf16.mxu0 %v2387_v40 }
  0x4b   :  { %2254 = vmatpush3.bf16.msra.mxu1 %v2407_v41 }
  0x4c   :  { %2255 = vmatprep.subr.bf16.mxu1 %v2411_v42  ;;  %v2436_v42 = vld [vmem:[%s3261_s4 + $0x1b0] ss:$12 sps:$4 sm:$0xff]  }
  0x4d   :  { %922 = vmatpush1.bf16.msra.mxu0 %v2385_v43  ;;  %v2439_v43 = vld [vmem:[%s3261_s4 + $0x1b8] ss:$12 sps:$4 sm:$0xff]  }
  0x4e   :  { %923 = vmatprep.subr.bf16.mxu0 %v2390_v44 }
  0x4f   :  { %2256 = vmatpush3.bf16.msra.mxu1 %v2412_v45 }
  0x50   :  { %2257 = vmatprep.subr.bf16.mxu1 %v2416_v46  ;;  %v2442_v46 = vld [vmem:[%s3261_s4 + $0x1cc] ss:$12 sps:$4 sm:$0xff]  }
  0x51   :  { %924 = vmatpush1.bf16.msra.mxu0 %v2388_v47 }
  0x52   :  { %925 = vmatprep.subr.bf16.mxu0 %v2395_v48 }
  0x53   :  { %2258 = vmatpush3.bf16.msra.mxu1 %v2417_v49  ;;  %v2440_v49 = vld [vmem:[%s3261_s4 + $0x1c8] ss:$12 sps:$4 sm:$0xff]  }
  0x54   :  { %2259 = vmatprep.subr.bf16.mxu1 %v2421_v61  ;;  %v2452_v61 = vld [vmem:[%s3261_s4 + $0x210] ss:$12 sps:$4 sm:$0xff]  }
  0x55   :  { %926 = vmatpush1.bf16.msra.mxu0 %v2393_v50  ;;  %v2443_v50 = vld [vmem:[%s3261_s4 + $0x1d0] ss:$12 sps:$4 sm:$0xff]  }
  0x56   :  { %927 = vmatprep.subr.bf16.mxu0 %v2400_v51 }
  0x57   :  { %2260 = vmatpush3.bf16.msra.mxu1 %v2422_v62  ;;  %v2455_v62 = vld [vmem:[%s3261_s4 + $0x218] ss:$12 sps:$4 sm:$0xff]  }
  0x58   :  { %2261 = vmatprep.subr.bf16.mxu1 %v2426_v0  ;;  %v2456_v0 = vld [vmem:[%s3261_s4 + $0x228] ss:$12 sps:$4 sm:$0xff]  }
  0x59   :  { %928 = vmatpush1.bf16.msra.mxu0 %v2398_v52  ;;  %v2446_v52 = vld [vmem:[%s3261_s4 + $0x1e4] ss:$12 sps:$4 sm:$0xff]  }
  0x5a   :  { %929 = vmatprep.subr.bf16.mxu0 %v2405_v53 }
  0x5b   :  { %2262 = vmatpush3.bf16.msra.mxu1 %v2427_v2 }
  0x5c   :  { %1029 = vmatprep.subr.bf16.mxu1 %v2572_v7 }
  0x5d   :  { %930 = vmatpush1.bf16.msra.mxu0 %v2403_v54  ;;  %v2444_v54 = vld [vmem:[%s3261_s4 + $0x1e0] ss:$12 sps:$4 sm:$0xff]  }
  0x5e   :  { %931 = vmatprep.subr.bf16.mxu0 %v2410_v55  ;;  %v2447_v55 = vld [vmem:[%s3261_s4 + $0x1e8] ss:$12 sps:$4 sm:$0xff]  }
  0x61   :  { %932 = vmatpush1.bf16.msra.mxu0 %v2408_v56  ;;  %v2450_v56 = vld [vmem:[%s3261_s4 + $0x1fc] ss:$12 sps:$4 sm:$0xff]  }
  0x62   :  { %933 = vmatprep.subr.bf16.mxu0 %v2415_v57  ;;  %v2448_v57 = vld [vmem:[%s3261_s4 + $0x1f8] ss:$12 sps:$4 sm:$0xff]  }
  0x65   :  { %934 = vmatpush1.bf16.msra.mxu0 %v2413_v58  ;;  %v2451_v58 = vld [vmem:[%s3261_s4 + $0x200] ss:$12 sps:$4 sm:$0xff]  }
  0x66   :  { %935 = vmatprep.subr.bf16.mxu0 %v2420_v59  ;;  %v2909_v59 = vsub.s32 2, %v2623_v5 }
  0x68   :  { %v365_v5 = vrot.slane %v2842_v6, %v2909_v59  ;;  %v2460_v6 = vld [vmem:[%s3261_s4 + $0x240] ss:$12 sps:$4 sm:$0xff]  }
  0x69   :  { %936 = vmatpush1.bf16.msra.mxu0 %v2418_v60  ;;  %v2454_v60 = vld [vmem:[%s3261_s4 + $0x214] ss:$12 sps:$4 sm:$0xff]  }
  0x6a   :  { %937 = vmatprep.subr.bf16.mxu0 %v2425_v63  ;;  %v2458_v63 = vld [vmem:[%s3261_s4 + $0x22c] ss:$12 sps:$4 sm:$0xff]  }
  0x6d   :  { %938 = vmatpush1.bf16.msra.mxu0 %v2423_v1  ;;  %v2459_v1 = vld [vmem:[%s3261_s4 + $0x230] ss:$12 sps:$4 sm:$0xff]  }
  0x6e   :  { %948 = vmatprep.subr.bf16.mxu0 %v2430_v3  ;;  %v2462_v3 = vld [vmem:[%s3261_s4 + $0x244] ss:$12 sps:$4 sm:$0xff]  }
 0x101   :  { %v190_v8 = vpop.f32.mrb[0].mxu1 }
 0x102   :  { %v192_v11 = vpop.f32.mrb[1].mxu1 }
 0x103   :  { %v304_v12 = vpop.f32.mrb[0].mxu0  ;;  %v194_v14 = vpop.f32.mrb[2].mxu1 }
 0x104   :  { %v305_v15 = vadd.f32 %v304_v12, %v190_v8  ;;  %v306_v16 = vpop.f32.mrb[1].mxu0  ;;  %v195_v17 = vpop.f32.mrb[3].mxu1  ;;  %v2463_v8 = vld [vmem:[%s3261_s4 + $0x248] ss:$12 sps:$4 sm:$0xff]   ;;  %v2464_v12 = vld [vmem:[%s3263_s5] ss:$12 sps:$4 sm:$0xff]  }
 0x105   :  { %v307_v18 = vadd.f32 %v306_v16, %v192_v11  ;;  %v308_v19 = vpop.f32.mrb[2].mxu0  ;;  %v2469_v14 = vld [vmem:[%s3263_s5 + $0x1c] ss:$12 sps:$4 sm:$0xff]   ;;  %v2472_v16 = vld [vmem:[%s3263_s5 + $0x34] ss:$12 sps:$4 sm:$0xff]  }
 0x106   :  { %v374_v20 = vadd.f32 %v357_v9, %v305_v15  ;;  %v309_v21 = vpop.f32.mrb[3].mxu0  ;;  %v2467_v15 = vld [vmem:[%s3263_s5 + $0x18] ss:$12 sps:$4 sm:$0xff]   ;;  %v2470_v17 = vld [vmem:[%s3263_s5 + $0x30] ss:$12 sps:$4 sm:$0xff]  }
 0x107   :  { %v375_v22 = vadd.f32 %v361_v13, %v307_v18  ;;  %v2466_v13 = vld [vmem:[%s3263_s5 + $0x4] ss:$12 sps:$4 sm:$0xff]   ;;  %v2475_v18 = vld [vmem:[%s3263_s5 + $0x4c] ss:$12 sps:$4 sm:$0xff]   ;;  %v2473_v19 = vld [vmem:[%s3263_s5 + $0x48] ss:$12 sps:$4 sm:$0xff]  }
 0x108   :  { %v378_v23 = vmax.f32 %v374_v20, 0.0  ;;  %v2478_v20 = vld [vmem:[%s3263_s5 + $0x64] ss:$12 sps:$4 sm:$0xff]   ;;  %v2476_v21 = vld [vmem:[%s3263_s5 + $0x60] ss:$12 sps:$4 sm:$0xff]  }
 0x109   :  { %v379_v24 = vmax.f32 %v375_v22, 0.0  ;;  %v231_v25 = vpop.f32.mrb[4].mxu1  ;;  %v2481_v22 = vld [vmem:[%s3263_s5 + $0x7c] ss:$12 sps:$4 sm:$0xff]  }
 0x10a   :  { %v233_v26 = vpop.f32.mrb[5].mxu1  ;;  %v382_v31 = vpack.c.bf16 %v378_v23, %v378_v23  ;;  %v2479_v23 = vld [vmem:[%s3263_s5 + $0x78] ss:$12 sps:$4 sm:$0xff]  }
 0x10b   :  { %v383_v27 = vpack.c.bf16 %v379_v24, %v379_v24  ;;  %v235_v30 = vpop.f32.mrb[6].mxu1  ;;  %v2484_v24 = vld [vmem:[%s3263_s5 + $0x94] ss:$12 sps:$4 sm:$0xff]  }
 0x10c   :  { %v236_v33 = vpop.f32.mrb[7].mxu1  ;;  %v2492_v30 = vld [vmem:[%s3263_s5 + $0x8] ss:$12 sps:$4 sm:$0xff]  }
 0x10d   :  { %939 = vmatprep.mubr.bf16.mxu0 %v383_v27  ;;  %1021 = vmatprep.mubr.bf16.mxu1 %v383_v27  ;;  %v2485_v27 = vld [vmem:[%s3263_s5 + $0xa8] ss:$12 sps:$4 sm:$0xff]  }
 0x10e   :  { %940 = vmatmul.mubr.bf16.vlgmr.msra.gmra.mrb[4].mxu0 %v382_v31  ;;  %1022 = vmatmul.mubr.bf16.vlgmr.msra.gmra.mrb[12].mxu1 %v382_v31  ;;  %v2488_v31 = vld [vmem:[%s3263_s5 + $0xc0] ss:$12 sps:$4 sm:$0xff]   ;;  %v2495_v33 = vld [vmem:[%s3263_s5 + $0xdc] ss:$12 sps:$4 sm:$0xff]  }
 0x10f   :  { %949 = vmatpush1.bf16.msra.mxu0 %v2428_v28  ;;  %1030 = vmatpush1.bf16.msra.mxu1 %v2431_v29  ;;  %v2491_v28 = vld [vmem:[%s3263_s5 + $0xc8] ss:$12 sps:$4 sm:$0xff]   ;;  %v2490_v29 = vld [vmem:[%s3263_s5 + $0xc4] ss:$12 sps:$4 sm:$0xff]  }
 0x110   :  { %950 = vmatprep.subr.bf16.mxu0 %v2434_v32  ;;  %1031 = vmatprep.subr.bf16.mxu1 %v2572_v7  ;;  %v2496_v32 = vld [vmem:[%s3263_s5 + $0xe0] ss:$12 sps:$4 sm:$0xff]  }
 0x111   :  { %v345_v38 = vpop.f32.mrb[8].mxu1 }
 0x112   :  { %v346_v40 = vadd.f32 %v345_v38, %v231_v25  ;;  %v347_v41 = vpop.f32.mrb[9].mxu1  ;;  %v2482_v25 = vld [vmem:[%s3263_s5 + $0x90] ss:$12 sps:$4 sm:$0xff]   ;;  %v2502_v38 = vld [vmem:[%s3263_s5 + $0x38] ss:$12 sps:$4 sm:$0xff]  }
 0x113   :  { %951 = vmatpush1.bf16.msra.mxu0 %v2432_v35  ;;  %1032 = vmatpush1.bf16.msra.mxu1 %v2435_v36  ;;  %v348_v44 = vadd.f32 %v347_v41, %v233_v26  ;;  %v349_v45 = vpop.f32.mrb[10].mxu1  ;;  %v2487_v26 = vld [vmem:[%s3263_s5 + $0xac] ss:$12 sps:$4 sm:$0xff]  }
 0x114   :  { %952 = vmatprep.subr.bf16.mxu0 %v2438_v37  ;;  %1033 = vmatprep.subr.bf16.mxu1 %v2572_v7  ;;  %v350_v47 = vpop.f32.mrb[11].mxu1  ;;  %v376_v2 = vadd.f32 %v365_v5, %v346_v40  ;;  %v2493_v35 = vld [vmem:[%s3263_s5 + $0xd8] ss:$12 sps:$4 sm:$0xff]   ;;  %v2500_v37 = vld [vmem:[%s3263_s5 + $0xf4] ss:$12 sps:$4 sm:$0xff]  }
 0x115   :  { %v377_v48 = vadd.f32 %v369_v39, %v348_v44  ;;  %v2501_v36 = vld [vmem:[%s3263_s5 + $0xf8] ss:$12 sps:$4 sm:$0xff]   ;;  %v2498_v39 = vld [vmem:[%s3263_s5 + $0xf0] ss:$12 sps:$4 sm:$0xff]   ;;  %v2511_v44 = vld [vmem:[%s3263_s5 + $0x128] ss:$12 sps:$4 sm:$0xff]  }
 0x116   :  { %v380_v9 = vmax.f32 %v376_v2, 0.0  ;;  %v2506_v40 = vld [vmem:[%s3263_s5 + $0x110] ss:$12 sps:$4 sm:$0xff]   ;;  %v2505_v41 = vld [vmem:[%s3263_s5 + $0x10c] ss:$12 sps:$4 sm:$0xff]  }
 0x117   :  { %953 = vmatpush1.bf16.msra.mxu0 %v2436_v42  ;;  %1034 = vmatpush1.bf16.msra.mxu1 %v2439_v43  ;;  %v381_v51 = vmax.f32 %v377_v48, 0.0  ;;  %v2507_v42 = vld [vmem:[%s3263_s5 + $0x50] ss:$12 sps:$4 sm:$0xff]   ;;  %v2503_v43 = vld [vmem:[%s3263_s5 + $0x108] ss:$12 sps:$4 sm:$0xff]  }
 0x118   :  { %954 = vmatprep.subr.bf16.mxu0 %v2442_v46  ;;  %1035 = vmatprep.subr.bf16.mxu1 %v2572_v7  ;;  %v384_v11 = vpack.c.bf16 %v380_v9, %v380_v9  ;;  %v2510_v45 = vld [vmem:[%s3263_s5 + $0x124] ss:$12 sps:$4 sm:$0xff]   ;;  %v2512_v46 = vld [vmem:[%s3263_s5 + $0x68] ss:$12 sps:$4 sm:$0xff]   ;;  %v2508_v47 = vld [vmem:[%s3263_s5 + $0x120] ss:$12 sps:$4 sm:$0xff]  }
 0x119   :  { %v385_v53 = vpack.c.bf16 %v381_v51, %v381_v51  ;;  %v2516_v48 = vld [vmem:[%s3263_s5 + $0x140] ss:$12 sps:$4 sm:$0xff]   ;;  %v2513_v51 = vld [vmem:[%s3263_s5 + $0x138] ss:$12 sps:$4 sm:$0xff]  }
 0x11b   :  { %955 = vmatpush1.bf16.msra.mxu0 %v2440_v49  ;;  %1036 = vmatpush1.bf16.msra.mxu1 %v2443_v50  ;;  %v2515_v49 = vld [vmem:[%s3263_s5 + $0x13c] ss:$12 sps:$4 sm:$0xff]   ;;  %v2517_v50 = vld [vmem:[%s3263_s5 + $0x80] ss:$12 sps:$4 sm:$0xff]  }
 0x11c   :  { %956 = vmatprep.subr.bf16.mxu0 %v2446_v52  ;;  %1037 = vmatprep.subr.bf16.mxu1 %v2572_v7  ;;  %v2521_v52 = vld [vmem:[%s3263_s5 + $0x158] ss:$12 sps:$4 sm:$0xff]  }
 0x11d   :  { %2160 = vmatprep.mubr.msk.bf16.mxu0 %vm903_vm4, %v385_v53  ;;  %2161 = vmatprep.mubr.msk.bf16.mxu1 %vm903_vm4, %v385_v53  ;;  %v2518_v53 = vld [vmem:[%s3263_s5 + $0x150] ss:$12 sps:$4 sm:$0xff]  }
 0x11f   :  { %957 = vmatpush1.bf16.msra.mxu0 %v2444_v54  ;;  %1038 = vmatpush1.bf16.msra.mxu1 %v2447_v55  ;;  %v2520_v54 = vld [vmem:[%s3263_s5 + $0x154] ss:$12 sps:$4 sm:$0xff]   ;;  %v2522_v55 = vld [vmem:[%s3263_s5 + $0x98] ss:$12 sps:$4 sm:$0xff]  }
 0x120   :  { %958 = vmatprep.subr.bf16.mxu0 %v2450_v56  ;;  %1039 = vmatprep.subr.bf16.mxu1 %v2572_v7  ;;  %v2525_v56 = vld [vmem:[%s3263_s5 + $0x16c] ss:$12 sps:$4 sm:$0xff]  }
 0x123   :  { %959 = vmatpush1.bf16.msra.mxu0 %v2448_v57  ;;  %1040 = vmatpush1.bf16.msra.mxu1 %v2451_v58  ;;  %v2526_v57 = vld [vmem:[%s3263_s5 + $0x170] ss:$12 sps:$4 sm:$0xff]  }
 0x124   :  { %960 = vmatprep.subr.bf16.mxu0 %v2454_v60  ;;  %1041 = vmatprep.subr.bf16.mxu1 %v2572_v7  ;;  %v2527_v58 = vld [vmem:[%s3263_s5 + $0xb0] ss:$12 sps:$4 sm:$0xff]   ;;  %v2523_v60 = vld [vmem:[%s3263_s5 + $0x168] ss:$12 sps:$4 sm:$0xff]  }
 0x127   :  { %961 = vmatpush1.bf16.msra.mxu0 %v2452_v61  ;;  %1042 = vmatpush1.bf16.msra.mxu1 %v2455_v62  ;;  %v2530_v61 = vld [vmem:[%s3263_s5 + $0x184] ss:$12 sps:$4 sm:$0xff]   ;;  %v2573_v62 = vmov 0.0  }
 0x128   :  { %962 = vmatprep.subr.bf16.mxu0 %v2458_v63  ;;  %1043 = vmatprep.subr.bf16.mxu1 %v2572_v7 }
 0x12b   :  { %963 = vmatpush1.bf16.msra.mxu0 %v2456_v0  ;;  %1044 = vmatpush1.bf16.msra.mxu1 %v2459_v1 }
 0x12c   :  { %964 = vmatprep.subr.bf16.mxu0 %v2462_v3  ;;  %1045 = vmatprep.subr.bf16.mxu1 %v2572_v7  ;;  %v486_v3 = vld [vmem:[%s3262_s7 + $0x8] sm:$0x7] }
 0x12d   :  { %v495_v9 = vrot.slane %v486_v3, %v2845_v10 }
 0x12f   :  { %965 = vmatpush1.bf16.msra.mxu0 %v2460_v6  ;;  %1046 = vmatpush1.bf16.msra.mxu1 %v2463_v8  ;;  %v499_v6 = vrot.slane %v486_v3, %v2909_v59  ;;  %v491_v8 = vrot.slane %v486_v3, %v2837_v4 }
 0x130   :  { %1590 = vmatprep.subr.bf16.mxu1 %v2466_v13  ;;  %2269 = vmatprep.subr.bf16.mxu0 %v2491_v28 }
 0x132   :  { %981 = vmatmul.mubr.bf16.vlgmr.msra.gmra.mrb[4].mxu0 %v384_v11  ;;  %1062 = vmatmul.mubr.bf16.vlgmr.msra.gmra.mrb[16].mxu1 %v384_v11 }
 0x133   :  { %1591 = vmatpush1.bf16.msra.mxu1 %v2464_v12  ;;  %2270 = vmatpush3.bf16.msra.mxu0 %v2492_v30 }
 0x134   :  { %1592 = vmatprep.subr.bf16.mxu1 %v2469_v14  ;;  %2271 = vmatprep.subr.bf16.mxu0 %v2496_v32 }
 0x137   :  { %1593 = vmatpush1.bf16.msra.mxu1 %v2467_v15  ;;  %2272 = vmatpush3.bf16.msra.mxu0 %v2497_v34 }
 0x138   :  { %1594 = vmatprep.subr.bf16.mxu1 %v2472_v16  ;;  %2273 = vmatprep.subr.bf16.mxu0 %v2501_v36 }
 0x13b   :  { %1595 = vmatpush1.bf16.msra.mxu1 %v2470_v17  ;;  %2274 = vmatpush3.bf16.msra.mxu0 %v2502_v38 }
 0x13c   :  { %1596 = vmatprep.subr.bf16.mxu1 %v2475_v18  ;;  %2275 = vmatprep.subr.bf16.mxu0 %v2506_v40 }
 0x13f   :  { %1597 = vmatpush1.bf16.msra.mxu1 %v2473_v19  ;;  %2276 = vmatpush3.bf16.msra.mxu0 %v2507_v42 }
 0x140   :  { %1598 = vmatprep.subr.bf16.mxu1 %v2478_v20  ;;  %2277 = vmatprep.subr.bf16.mxu0 %v2511_v44 }
 0x143   :  { %1599 = vmatpush1.bf16.msra.mxu1 %v2476_v21  ;;  %2278 = vmatpush3.bf16.msra.mxu0 %v2512_v46 }
 0x144   :  { %1600 = vmatprep.subr.bf16.mxu1 %v2481_v22  ;;  %2279 = vmatprep.subr.bf16.mxu0 %v2516_v48 }
 0x147   :  { %1601 = vmatpush1.bf16.msra.mxu1 %v2479_v23  ;;  %2280 = vmatpush3.bf16.msra.mxu0 %v2517_v50 }
 0x148   :  { %1602 = vmatprep.subr.bf16.mxu1 %v2484_v24  ;;  %2281 = vmatprep.subr.bf16.mxu0 %v2521_v52 }
 0x14b   :  { %1603 = vmatpush1.bf16.msra.mxu1 %v2482_v25  ;;  %2282 = vmatpush3.bf16.msra.mxu0 %v2522_v55 }
 0x14c   :  { %1604 = vmatprep.subr.bf16.mxu1 %v2487_v26  ;;  %2283 = vmatprep.subr.bf16.mxu0 %v2526_v57 }
 0x14f   :  { %1605 = vmatpush1.bf16.msra.mxu1 %v2485_v27  ;;  %2284 = vmatpush3.bf16.msra.mxu0 %v2527_v58 }
 0x150   :  { %1606 = vmatprep.subr.bf16.mxu1 %v2490_v29  ;;  %2321 = vmatprep.subr.bf16.mxu0 %v2573_v62 }
 0x153   :  { %1607 = vmatpush1.bf16.msra.mxu1 %v2488_v31 }
 0x154   :  { %1608 = vmatprep.subr.bf16.mxu1 %v2495_v33 }
 0x157   :  { %1609 = vmatpush1.bf16.msra.mxu1 %v2493_v35 }
 0x158   :  { %1610 = vmatprep.subr.bf16.mxu1 %v2500_v37 }
 0x15b   :  { %1611 = vmatpush1.bf16.msra.mxu1 %v2498_v39 }
 0x15c   :  { %1612 = vmatprep.subr.bf16.mxu1 %v2505_v41 }
 0x15f   :  { %1613 = vmatpush1.bf16.msra.mxu1 %v2503_v43 }
 0x160   :  { %1614 = vmatprep.subr.bf16.mxu1 %v2510_v45 }
 0x163   :  { %1615 = vmatpush1.bf16.msra.mxu1 %v2508_v47 }
 0x164   :  { %1616 = vmatprep.subr.bf16.mxu1 %v2515_v49 }
 0x167   :  { %1617 = vmatpush1.bf16.msra.mxu1 %v2513_v51 }
 0x168   :  { %1618 = vmatprep.subr.bf16.mxu1 %v2520_v54 }
 0x16b   :  { %1619 = vmatpush1.bf16.msra.mxu1 %v2518_v53 }
 0x16c   :  { %1620 = vmatprep.subr.bf16.mxu1 %v2525_v56 }
 0x16f   :  { %1621 = vmatpush1.bf16.msra.mxu1 %v2523_v60 }
 0x170   :  { %1631 = vmatprep.subr.bf16.mxu1 %v2530_v61 }
 0x1e1   :  { %v2263_v5 = vpop.f32.mrb[12].mxu1 }
 0x1e2   :  { %v2264_v63 = vpop.f32.mrb[13].mxu1 }
 0x1e3   :  { %v2265_v0 = vadd.f32 %v2264_v63, %v2263_v5  ;;  %v2266_v1 = vpop.f32.mrb[14].mxu1 }
 0x1e4   :  { %v2267_v2 = vpop.f32.mrb[15].mxu1 }
 0x1e5   :  { %v1024_v11 = vadd.f32 %v2265_v0, %v499_v6 }
 0x205   :  { %v982_v12 = vpop.f32.mrb[4].mxu0  ;;  %v1063_v13 = vpop.f32.mrb[16].mxu1 }
 0x206   :  { %v3098_v14 = vadd.f32 %v982_v12, %v491_v8  ;;  %v3100_v15 = vadd.f32 %v1063_v13, %v1024_v11  ;;  %v984_v16 = vpop.f32.mrb[5].mxu0  ;;  %v1065_v17 = vpop.f32.mrb[17].mxu1 }
 0x207   :  { %v3102_v18 = vadd.f32 %v984_v16, %v495_v9  ;;  %v986_v19 = vpop.f32.mrb[6].mxu0  ;;  %v1066_v20 = vpop.f32.mrb[18].mxu1 }
 0x208   :  { %v1071_v21 = vrot.slane %v3098_v14, 4  ;;  %v1094_v22 = vmul.f32 %v3098_v14, %v3098_v14  ;;  %v1084_v23 = vsel %vm1083_vm5, %v3100_v15, 0.0  ;;  %v1096_v24 = vmul.f32 %v3100_v15, %v3100_v15  ;;  %v987_v25 = vpop.f32.mrb[7].mxu0  ;;  %v1067_v26 = vpop.f32.mrb[19].mxu1 }
 0x209   :  { %v1085_v27 = vrot.slane %v1084_v23, 4  ;;  %v1077_v28 = vrot.slane %v3102_v18, 4  ;;  %v1095_v29 = vmul.f32 %v3102_v18, %v3102_v18  ;;  %v1069_v26 = vld [vmem:[%s3262_s7 + $0xb] sm:$0x7] }
 0x20a   :  { %v1072_v30 = vadd.f32 %v3098_v14, %v1071_v21  ;;  %v1097_v31 = vrot.slane %v1094_v22, 4  ;;  %v1109_v32 = vsel %vm1083_vm5, %v1096_v24, 0.0 }
 0x20b   :  { %v1086_v33 = vadd.f32 %v1085_v27, %v1084_v23  ;;  %v1110_v34 = vrot.slane %v1109_v32, 4  ;;  %v1078_v35 = vadd.f32 %v3102_v18, %v1077_v28  ;;  %v1103_v36 = vrot.slane %v1095_v29, 4  ;;  %v1070_v27 = vld [vmem:[%s3262_s7 + $0xe] sm:$0x7] }
 0x20c   :  { %v1073_v37 = vrot.slane %v1072_v30, 2  ;;  %v1098_v38 = vadd.f32 %v1097_v31, %v1094_v22 }
 0x20d   :  { %v1087_v39 = vrot.slane %v1086_v33, 2  ;;  %v1111_v40 = vadd.f32 %v1110_v34, %v1109_v32  ;;  %v1079_v41 = vrot.slane %v1078_v35, 2  ;;  %v1104_v42 = vadd.f32 %v1103_v36, %v1095_v29 }
 0x20e   :  { %v1074_v43 = vadd.f32 %v1073_v37, %v1072_v30  ;;  %v1099_v44 = vrot.slane %v1098_v38, 2  ;;  %v1144_v29 = vrot.slane %v1069_v26, %v2837_v4  ;;  %v1163_v34 = vrot.slane %v1070_v27, %v2837_v4 }
 0x20f   :  { %v1088_v45 = vadd.f32 %v1087_v39, %v1086_v33  ;;  %v1112_v46 = vrot.slane %v1111_v40, 2  ;;  %v1080_v47 = vadd.f32 %v1079_v41, %v1078_v35  ;;  %v1105_v48 = vrot.slane %v1104_v42, 2 }
 0x210   :  { %v1075_v49 = vrot.slane %v1074_v43, 1  ;;  %v1100_v50 = vadd.f32 %v1099_v44, %v1098_v38  ;;  %v1148_v33 = vrot.slane %v1069_v26, %v2845_v10  ;;  %v1167_v37 = vrot.slane %v1070_v27, %v2845_v10 }
 0x211   :  { %v1089_v51 = vrot.slane %v1088_v45, 1  ;;  %v1113_v52 = vadd.f32 %v1112_v46, %v1111_v40  ;;  %v1081_v53 = vrot.slane %v1080_v47, 1  ;;  %v1106_v54 = vadd.f32 %v1105_v48, %v1104_v42  ;;  %v2531_v48 = vld [vmem:[%s3263_s5 + $0x188] ss:$12 sps:$4 sm:$0xff]  }
 0x212   :  { %v1076_v55 = vadd.f32 %v1075_v49, %v1074_v43  ;;  %v1101_v56 = vrot.slane %v1100_v50, 1  ;;  %v1152_v44 = vrot.slane %v1069_v26, %v2909_v59 }
 0x213   :  { %v1090_v57 = vadd.f32 %v1089_v51, %v1088_v45  ;;  %v1114_v58 = vrot.slane %v1113_v52, 1  ;;  %v1082_v60 = vadd.f32 %v1081_v53, %v1080_v47  ;;  %v1107_v61 = vrot.slane %v1106_v54, 1  ;;  %v2528_v47 = vld [vmem:[%s3263_s5 + $0x180] ss:$12 sps:$4 sm:$0xff]  }
 0x214   :  { %v1091_v5 = vmul.f32 0.125, %v1076_v55  ;;  %v1102_v63 = vadd.f32 %v1101_v56, %v1100_v50  ;;  %v1171_v50 = vrot.slane %v1070_v27, %v2909_v59  ;;  %v2535_v53 = vld [vmem:[%s3263_s5 + $0x1a0] ss:$12 sps:$4 sm:$0xff]   ;;  %v2538_v55 = vld [vmem:[%s3263_s5 + $0x1b0] ss:$12 sps:$4 sm:$0x3f]  }
 0x215   :  { %v1093_v0 = vmul.f32 0.125, %v1090_v57  ;;  %v1115_v1 = vadd.f32 %v1114_v58, %v1113_v52  ;;  %v1092_v2 = vmul.f32 0.125, %v1082_v60  ;;  %v1108_v3 = vadd.f32 %v1107_v61, %v1106_v54  ;;  %v2532_v52 = vld [vmem:[%s3263_s5 + $0x198] ss:$12 sps:$4 sm:$0xff]  }
 0x216   :  { %v1116_v6 = vmul.f32 0.125, %v1102_v63  ;;  %v1119_v8 = vmul.f32 %v1091_v5, %v1091_v5  ;;  %v1128_v28 = vsub.f32 %v3098_v14, %v1091_v5  ;;  %v2536_v54 = vld [vmem:[%s3263_s5 + $0x1b4] ss:$12 sps:$4 sm:$0x3f]   ;;  %v1582_v58 = vsel %vm257_vm0, %v2538_v55, 0 }
 0x217   :  { %v1118_v9 = vmul.f32 0.125, %v1115_v1  ;;  %v1121_v11 = vmul.f32 %v1093_v0, %v1093_v0  ;;  %v1117_v12 = vmul.f32 0.125, %v1108_v3  ;;  %v1120_v16 = vmul.f32 %v1092_v2, %v1092_v2  ;;  %v2539_v56 = vld [vmem:[%s3263_s5 + $0x1b8] ss:$12 sps:$4 sm:$0x3f]   ;;  %v2543_v1 = vld [vmem:[%s3264_s6 + $0x8] sm:$0xff]  }
 0x218   :  { %v1122_v13 = vsub.f32 %v1116_v6, %v1119_v8  ;;  %v1129_v32 = vsub.f32 %v3102_v18, %v1092_v2  ;;  %v1130_v14 = vsub.f32 %v3100_v15, %v1093_v0  ;;  %v2534_v15 = vld [vmem:[%s3263_s5 + $0x19c] ss:$12 sps:$4 sm:$0xff]   ;;  %v1588_v60 = vsel %vm257_vm0, %v2539_v56, 0  ;;  %v2540_v5 = vld [vmem:[%s3264_s6 + $0x40] sm:$0xff]   ;;  %v2544_v2 = vld [vmem:[%s3264_s6 + $0x50] sm:$0xff]  }
 0x219   :  { %v1124_v17 = vsub.f32 %v1118_v9, %v1121_v11  ;;  %v1123_v20 = vsub.f32 %v1117_v12, %v1120_v16  ;;  %v2542_v0 = vld [vmem:[%s3264_s6 + $0x48] sm:$0xff]   ;;  %v2545_v3 = vld [vmem:[%s3264_s6 + $0x10] sm:$0xff]   ;;  %v2546_v6 = vld [vmem:[%s3264_s6 + $0x58] sm:$0xff]  }
 0x21a   :  { %v1125_v19 = vmax.f32 %v1122_v13, 0.0  ;;  %v2547_v8 = vld [vmem:[%s3264_s6 + $0x18] sm:$0xff]   ;;  %v2548_v9 = vld [vmem:[%s3264_s6 + $0x60] sm:$0xff]   ;;  %v2551_v13 = vld [vmem:[%s3264_s6 + $0x68] sm:$0xff]  }
 0x21b   :  { %v1127_v21 = vmax.f32 %v1124_v17, 0.0  ;;  %v1126_v23 = vmax.f32 %v1123_v20, 0.0  ;;  %v2549_v11 = vld [vmem:[%s3264_s6 + $0x20] sm:$0xff]   ;;  %v2552_v16 = vld [vmem:[%s3264_s6 + $0x28] sm:$0xff]   ;;  %v2555_v20 = vld [vmem:[%s3264_s6 + $0x30] sm:$0xff]  }
 0x21c   :  { %v1131_v22 = vadd.f32 1e-05, %v1125_v19  ;;  %v2550_v12 = vld [vmem:[%s3264_s6 + $0x80] sm:$0xff]   ;;  %v2553_v17 = vld [vmem:[%s3264_s6 + $0x88] sm:$0xff]   ;;  %v2554_v19 = vld [vmem:[%s3264_s6 + $0x70] sm:$0xff]  }
 0x21d   :  { %v1132_v24 = vadd.f32 1e-05, %v1126_v23  ;;  %v1133_v25 = vadd.f32 1e-05, %v1127_v21  ;;  %v2556_v21 = vld [vmem:[%s3264_s6 + $0x90] sm:$0x3f]  }
 0x21e   :  { %2563 = vrsqrt.f32 %v1131_v22  ;;  %v1920_v22 = vsel %vm257_vm0, %v2556_v21, 0  ;;  %v2557_v23 = vld [vmem:[%s3264_s6 + $0x78] sm:$0xff]  }
 0x21f   :  { %2565 = vrsqrt.f32 %v1132_v24  ;;  %v2558_v24 = vld [vmem:[%s3264_s6 + $0x38] sm:$0xff]  }
 0x220   :  { %2567 = vrsqrt.f32 %v1133_v25 }
 0x228   :  { %v2564_v30 = vpop.eup %2563 }
 0x229   :  { %v1137_v31 = vmul.f32 %v2564_v30, %v1128_v28  ;;  %v2566_v35 = vpop.eup %2565 }
 0x22a   :  { %v1138_v36 = vmul.f32 %v2566_v35, %v1129_v32  ;;  %v2568_v39 = vpop.eup %2567 }
 0x22b   :  { %v1156_v38 = vmul.f32 %v1144_v29, %v1137_v31  ;;  %v1139_v43 = vmul.f32 %v2568_v39, %v1130_v14  ;;  %v1260_v29 = vld [vmem:[%s3262_s7 + $0x11] sm:$0x7] }
 0x22c   :  { %v1157_v40 = vmul.f32 %v1148_v33, %v1138_v36  ;;  %v1273_v30 = vrot.slane %v1260_v29, %v2909_v59  ;;  %v1265_v31 = vrot.slane %v1260_v29, %v2837_v4  ;;  %v1269_v32 = vrot.slane %v1260_v29, %v2845_v10 }
 0x22d   :  { %v1175_v41 = vadd.f32 %v1163_v34, %v1156_v38  ;;  %v1158_v49 = vmul.f32 %v1152_v44, %v1139_v43 }
 0x22e   :  { %v1176_v42 = vadd.f32 %v1167_v37, %v1157_v40 }
 0x22f   :  { %v1178_v45 = vmax.f32 %v1175_v41, 0.0  ;;  %v1177_v57 = vadd.f32 %v1171_v50, %v1158_v49 }
 0x230   :  { %v1179_v18 = vmax.f32 %v1176_v42, 0.0 }
 0x231   :  { %v1181_v51 = vpack.c.bf16 %v1178_v45, %v1178_v45  ;;  %v1180_v61 = vmax.f32 %v1177_v57, 0.0 }
 0x232   :  { %v1182_v46 = vpack.c.bf16 %v1179_v18, %v1179_v18 }
 0x233   :  { %v1183_v63 = vpack.c.bf16 %v1180_v61, %v1180_v61 }
 0x234   :  { %1622 = vmatprep.mubr.bf16.mxu1 %v1182_v46  ;;  %1704 = vmatprep.mubr.bf16.mxu0 %v1182_v46 }
 0x235   :  { %1623 = vmatmul.mubr.bf16.vlgmr.msra.gmra.mrb[20].mxu1 %v1181_v51  ;;  %1705 = vmatmul.mubr.bf16.vlgmr.msra.gmra.mrb[8].mxu0 %v1181_v51  ;;  %v2222_v51 = vld [vmem:[%s3262_s7 + $0x14] ss:$0 sm:$0xff] }
 0x236   :  { %1632 = vmatpush1.bf16.msra.mxu1 %v2528_v47  ;;  %2322 = vmatpush3.bf16.msra.mxu0 %v2531_v48 }
 0x237   :  { %1633 = vmatprep.subr.bf16.mxu1 %v2534_v15  ;;  %2323 = vmatprep.subr.bf16.mxu0 %v2573_v62 }
 0x238   :  { %2327 = vmatprep.mubr.msk.bf16.mxu0 %vm2574_vm6, %v2573_v62  ;;  %1663 = vmatprep.mubr.bf16.mxu1 %v2572_v7  ;;  %v2541_v7 = vld [vmem:[%s3264_s6] sm:$0xff]  }
 0x23a   :  { %1634 = vmatpush1.bf16.msra.mxu1 %v2532_v52  ;;  %2324 = vmatpush3.bf16.msra.mxu0 %v2535_v53 }
 0x23b   :  { %2219 = vmatprep.subr.msk.bf16.mxu1 %vm257_vm0, %v2536_v54  ;;  %2325 = vmatprep.subr.bf16.mxu0 %v2573_v62 }
 0x23e   :  { %1636 = vmatpush1.bf16.msra.mxu1 %v1582_v58  ;;  %2326 = vmatpush3.bf16.msra.mxu0 %v1588_v60 }
 0x23f   :  { %2295 = vmatprep.subr.bf16.mxu0 %v2540_v5  ;;  %2331 = vmatprep.subr.bf16.mxu1 %v2573_v62 }
 0x241   :  { %2328 = vmatmul.mubr.msk.bf16.vlgmr.msra.gmra.mrb[12].mxu0 %vm1083_vm5, %v1183_v63  ;;  %2220 = vmatmul.mubr.msk.bf16.vlgmr.msra.gmra.mrb[20].mxu1 %vm1083_vm5, %v1183_v63 }
 0x242   :  { %2296 = vmatpush3.bf16.msra.mxu0 %v2541_v7  ;;  %2337 = vmatprep.mubr.msk.bf16.mxu1 %vm2574_vm6, %v2573_v62 }
 0x243   :  { %2297 = vmatprep.subr.bf16.mxu0 %v2542_v0  ;;  %2332 = vmatpush3.bf16.msra.mxu1 %v2550_v12 }
 0x244   :  { %2333 = vmatprep.subr.bf16.mxu1 %v2573_v62 }
 0x246   :  { %2298 = vmatpush3.bf16.msra.mxu0 %v2543_v1 }
 0x247   :  { %2299 = vmatprep.subr.bf16.mxu0 %v2544_v2  ;;  %2334 = vmatpush3.bf16.msra.mxu1 %v2553_v17 }
 0x248   :  { %2335 = vmatprep.subr.bf16.mxu1 %v2573_v62 }
 0x24a   :  { %2300 = vmatpush3.bf16.msra.mxu0 %v2545_v3 }
 0x24b   :  { %2301 = vmatprep.subr.bf16.mxu0 %v2546_v6  ;;  %2336 = vmatpush3.bf16.msra.mxu1 %v1920_v22 }
 0x24e   :  { %2302 = vmatpush3.bf16.msra.mxu0 %v2547_v8 }
 0x24f   :  { %2303 = vmatprep.subr.bf16.mxu0 %v2548_v9 }
 0x252   :  { %2304 = vmatpush3.bf16.msra.mxu0 %v2549_v11 }
 0x253   :  { %2305 = vmatprep.subr.bf16.mxu0 %v2551_v13 }
 0x256   :  { %2306 = vmatpush3.bf16.msra.mxu0 %v2552_v16 }
 0x257   :  { %2307 = vmatprep.subr.bf16.mxu0 %v2554_v19 }
 0x25a   :  { %2308 = vmatpush3.bf16.msra.mxu0 %v2555_v20 }
 0x25b   :  { %2309 = vmatprep.subr.bf16.mxu0 %v2557_v23  ;;  %v2243_v23 = vld [vmem:[%s3262_s7 + $0x15] ss:$0 sm:$0xff] }
 0x25e   :  { %2310 = vmatpush3.bf16.msra.mxu0 %v2558_v24 }
 0x308   :  { %v2285_v62 = vpop.f32.mrb[8].mxu0 }
 0x309   :  { %v2286_v25 = vpop.f32.mrb[9].mxu0 }
 0x30a   :  { %v2287_v26 = vadd.f32 %v2286_v25, %v2285_v62  ;;  %v2288_v27 = vpop.f32.mrb[10].mxu0  ;;  %v2244_v62 = vld [vmem:[%s3262_s7 + $0x16] ss:$0 sm:$0xff] }
 0x30b   :  { %v2289_v28 = vpop.f32.mrb[11].mxu0  ;;  %v2245_v27 = vld [vmem:[%s3262_s7 + $0x17] ss:$0 sm:$0xff] }
 0x30c   :  { %v1707_v33 = vadd.f32 %v2287_v26, %v1273_v30 }
 0x314   :  { %v1746_v34 = vpop.f32.mrb[12].mxu0  ;;  %v1665_v35 = vpop.f32.mrb[20].mxu1 }
 0x315   :  { %v1747_v36 = vadd.f32 %v1746_v34, %v1707_v33  ;;  %v2343_v37 = vadd.f32 %v1665_v35, %v1265_v31  ;;  %v2329_v38 = vpop.f32.mrb[13].mxu0  ;;  %v1667_v39 = vpop.f32.mrb[21].mxu1  ;;  %v2246_v31 = vld [vmem:[%s3262_s7 + $0x18] ss:$0 sm:$0xff] }
 0x316   :  { %v2344_v40 = vadd.f32 %v1667_v39, %v1269_v32  ;;  %v1749_v41 = vpop.f32.mrb[14].mxu0  ;;  %v1669_v14 = vpop.f32.mrb[22].mxu1 }
 0x317   :  { %v1754_v42 = vmax.f32 %v1747_v36, 0.0  ;;  %v1752_v43 = vmax.f32 %v2343_v37, 0.0  ;;  %v2330_v44 = vpop.f32.mrb[15].mxu0  ;;  %v1670_v45 = vpop.f32.mrb[23].mxu1 }
 0x318   :  { %v1753_v18 = vmax.f32 %v2344_v40, 0.0 }
 0x319   :  { %v1757_v59 = vpack.c.bf16 %v1754_v42, %v1754_v42  ;;  %v1755_v4 = vpack.c.bf16 %v1752_v43, %v1752_v43 }
 0x31a   :  { %v1756_v46 = vpack.c.bf16 %v1753_v18, %v1753_v18 }
 0x31b   :  { %2338 = vmatmul.mubr.msk.bf16.vlgmr.msra.gmra.mrb[24].mxu1 %vm1083_vm5, %v1757_v59 }
 0x31c   :  { %1954 = vmatprep.mubr.bf16.mxu0 %v1756_v46 }
 0x31d   :  { %1955 = vmatmul.mubr.bf16.vlgmr.msra.gmra.mrb[16].mxu0 %v1755_v4 }
 0x3ee   :  { %v1996_v10 = vpop.f32.mrb[24].mxu1 }
 0x3ef   :  { %v2339_v47 = vpop.f32.mrb[25].mxu1 }
 0x3f0   :  { %v1999_v48 = vpop.f32.mrb[26].mxu1  ;;  %v2311_v49 = vpop.f32.mrb[16].mxu0 }
 0x3f1   :  { %v2340_v50 = vpop.f32.mrb[27].mxu1  ;;  %v2312_v15 = vpop.f32.mrb[17].mxu0 }
 0x3f2   :  { %v2313_v52 = vadd.f32 %v2312_v15, %v2311_v49  ;;  %v2314_v53 = vpop.f32.mrb[18].mxu0 }
 0x3f3   :  { %v2315_v54 = vpop.f32.mrb[19].mxu0 }
 0x3f4   :  { %v1957_v55 = vadd.f32 %v2313_v52, %v2222_v51 }
 0x3f6   :  { %v1997_v56 = vadd.f32 %v1996_v10, %v1957_v55 }
 0x3f8   :  { %v2005_v57 = vsel %vm2004_vm7, %v1997_v56, 0.0  ;;  %v2013_v58 = vmul.f32 %v1997_v56, %v1997_v56 }
 0x3f9   :  { %v2006_v60 = vrot.slane %v2005_v57, 4 }
 0x3fa   :  { %v2014_v61 = vsel %vm2004_vm7, %v2013_v58, 0.0 }
 0x3fb   :  { %v2007_v5 = vadd.f32 %v2006_v60, %v2005_v57  ;;  %v2015_v7 = vrot.slane %v2014_v61, 4 }
 0x3fd   :  { %v2008_v63 = vrot.slane %v2007_v5, 2  ;;  %v2016_v0 = vadd.f32 %v2015_v7, %v2014_v61 }
 0x3ff   :  { %v2009_v1 = vadd.f32 %v2008_v63, %v2007_v5  ;;  %v2017_v2 = vrot.slane %v2016_v0, 2 }
 0x401   :  { %v2010_v3 = vrot.slane %v2009_v1, 1  ;;  %v2018_v6 = vadd.f32 %v2017_v2, %v2016_v0 }
 0x403   :  { %v2011_v8 = vadd.f32 %v2010_v3, %v2009_v1  ;;  %v2019_v9 = vrot.slane %v2018_v6, 1 }
 0x405   :  { %v2012_v11 = vmul.f32 0.125, %v2011_v8  ;;  %v2020_v12 = vadd.f32 %v2019_v9, %v2018_v6 }
 0x407   :  { %v2021_v13 = vmul.f32 0.125, %v2020_v12  ;;  %v2022_v16 = vmul.f32 %v2012_v11, %v2012_v11  ;;  %v2025_v21 = vsub.f32 %v1997_v56, %v2012_v11 }
 0x409   :  { %v2023_v17 = vsub.f32 %v2021_v13, %v2022_v16 }
 0x40b   :  { %v2024_v19 = vmax.f32 %v2023_v17, 0.0 }
 0x40d   :  { %v2026_v20 = vadd.f32 1e-05, %v2024_v19 }
 0x40f   :  { %2569 = vrsqrt.f32 %v2026_v20 }
 0x419   :  { %v2570_v22 = vpop.eup %2569 }
 0x41a   :  { %v2028_v24 = vmul.f32 %v2570_v22, %v2025_v21 }
 0x41c   :  { %v2035_v25 = vmul.f32 %v2243_v23, %v2028_v24 }
 0x41e   :  { %v2042_v26 = vadd.f32 %v2244_v62, %v2035_v25 }
 0x420   :  { %v2043_v28 = vmax.f32 %v2042_v26, 0.0 }
 0x422   :  { %v2051_v29 = vmul.f32 %v2245_v27, %v2043_v28 }
 0x424   :  { %v2052_v30 = vsel %vm2004_vm7, %v2051_v29, 0.0 }
 0x425   :  { %2053 = vadd.xlane.f32.xlu0 %v2052_v30 }
 0x4b2   :  { %v2054_v32 = vpop.xlane.xlu0 %2053 }
 0x4b3   :  { %v2062_v33 = vadd.f32 %v2246_v31, %v2054_v32 }
 0x4b5   :  { %2064 = vst.msk [vmem:[%s3265_s8] sm:$0xff] %vm2063_vm8, %v2062_v33 }

</bundles_post_ra>
